<compile_context>
chip_gen: v6e
topology: v6e:2x2x1
jax: 0.10.0
libtpu: 0.0.40
codegen_flags: <defaults>
</compile_context>

<pallas_src>
import jax
import jax.numpy as jnp
from jax.experimental import pallas as pl
from jax.experimental.pallas import tpu as pltpu


def _norm_kernel(img_ref, sb_ref, out_ref):
    # img_ref/out_ref: (bm, bc) tiles.  sb_ref: (bm, 2) packed [scale, bias] rows.
    sb = sb_ref[...]                      # (bm, 2) f32
    scale = sb[:, 0:1]                    # (bm, 1), broadcast over lanes
    bias = sb[:, 1:2]
    x = img_ref[...].astype(jnp.float32)  # compute in f32 even for bf16 inputs
    out_ref[...] = (x * scale + bias).astype(out_ref.dtype)


def _round_down(x, m):
    return max(m, (x // m) * m)


def _round_up(x, m):
    return ((x + m - 1) // m) * m


def _vmem_budget():
    """(physical VMEM bytes, scoped vmem limit to request)."""
    try:
        cap = int(pltpu.get_tpu_info().vmem_capacity_bytes)
    except Exception:
        cap = 64 * 1024 * 1024            # conservative fallback (v7x per-TC)
    # Keep headroom: 48 MiB limit on a 64 MiB chip, 96 MiB on 128 MiB chips.
    limit = min(cap * 3 // 4, 96 * 1024 * 1024)
    return cap, limit


def normalization_forward(img, mean, std, out_dtype=None):
    """(img - mean[:, None, None]) / std[:, None, None] for NCHW img."""
    N, C, H, W = img.shape
    rows, cols = N * C, H * W
    out_dtype = img.dtype if out_dtype is None else out_dtype

    # ---- wrapper-side precompute (tiny, always f32 for accuracy) -------------
    inv_std = 1.0 / std.astype(jnp.float32)
    sb_c = jnp.stack([inv_std, -mean.astype(jnp.float32) * inv_std], axis=-1)  # (C, 2)
    sb = jnp.tile(sb_c, (N, 1))                                                # (rows, 2)

    x2d = img.reshape(rows, cols)

    # ---- generation-aware tile sizing ---------------------------------------
    _, vmem_limit = _vmem_budget()
    in_b = jnp.dtype(img.dtype).itemsize
    out_b = jnp.dtype(out_dtype).itemsize
    # Double-buffered in + out streams must fit inside the scoped limit with
    # ~1/3 headroom (sb side-array + pipeline bookkeeping are tiny).
    tile_elems_budget = max(8 * 128, (vmem_limit * 2 // 3) // (2 * (in_b + out_b)))

    # Lane dim: as wide as possible (lane-dense stores), capped at 8192 lanes.
    bc = cols if cols <= 8192 else _round_down(min(cols, 8192), 128)
    # Sublane dim: fill the remaining element budget.
    max_bm = max(8, tile_elems_budget // bc)
    bm = rows if rows <= max_bm else _round_down(max_bm, 8)

    row_blocks = pl.cdiv(rows, bm)
    col_blocks = pl.cdiv(cols, bc)

    # Single-tile kernel but enough rows: split rows so both v7x cores get work.
    if row_blocks == 1 and col_blocks == 1 and rows >= 16:
        cand = _round_up((rows + 1) // 2, 8)
        if cand < rows:
            bm = cand
            row_blocks = pl.cdiv(rows, bm)

    # Keep the leading "parallel" axis >= 2 blocks when possible (v7x megacore).
    if row_blocks == 1 and col_blocks >= 2:
        grid = (col_blocks, row_blocks)
        img_map = lambda j, i: (i, j)
        sb_map = lambda j, i: (i, 0)
    else:
        grid = (row_blocks, col_blocks)
        img_map = lambda i, j: (i, j)
        sb_map = lambda i, j: (i, 0)

    out2d = pl.pallas_call(
        _norm_kernel,
        out_shape=jax.ShapeDtypeStruct((rows, cols), out_dtype),
        grid=grid,
        in_specs=[
            pl.BlockSpec((bm, bc), img_map),   # image tile
            pl.BlockSpec((bm, 2), sb_map),     # packed per-row [scale, bias]
        ],
        out_specs=pl.BlockSpec((bm, bc), img_map),
        compiler_params=pltpu.CompilerParams(
            dimension_semantics=("parallel", "parallel"),
            vmem_limit_bytes=int(vmem_limit),
        ),
    )(x2d, sb)

    # TODO(synk): the biggest remaining win is fusing this normalize into its
    # consumer (and/or accepting uint8 input + bf16 output) to remove the
    # standalone HBM round-trip entirely.
    return out2d.reshape(N, C, H, W)


if __name__ == "__main__":
    # Deterministic parameters from the module's __init__ (ImageNet stats).
    mean = jnp.array([0.485, 0.456, 0.406], dtype=jnp.float32)
    std = jnp.array([0.229, 0.224, 0.225], dtype=jnp.float32)

    # Small NCHW input consistent with 3-channel image normalization.
    key = jax.random.PRNGKey(0)
    img = jax.random.uniform(key, (2, 3, 16, 16), dtype=jnp.float32)

    out = normalization_forward(img, mean, std)
    out = jax.block_until_ready(out)

    # Reference: plain JAX broadcasting, mirrors the PyTorch forward exactly.
    ref = (img - mean[None, :, None, None]) / std[None, :, None, None]
    assert out.shape == ref.shape, "shape mismatch vs reference"
    assert out.dtype == ref.dtype, "dtype mismatch vs reference"
    assert jnp.allclose(out, ref, atol=1e-5, rtol=1e-5), "mismatch vs reference"

    print("KERNEL_OK")
</pallas_src>

<mosaic_0001>
module attributes {stable_mosaic.version = 11 : i64} {
  func.func @_norm_kernel(%arg0: i32, %arg1: i32, %arg2: memref<6x256xf32, #tpu.memory_space<vmem>>, %arg3: memref<6x2xf32, #tpu.memory_space<vmem>>, %arg4: memref<6x256xf32, #tpu.memory_space<vmem>>) attributes {dimension_semantics = [#tpu.dimension_semantics<parallel>, #tpu.dimension_semantics<parallel>], iteration_bounds = array<i64: 1, 1>, scalar_prefetch = 0 : i64, scratch_operands = 0 : i64, tpu.core_type = #tpu.core_type<tc>, window_params = [{transform_indices = @transform_0, window_bounds = array<i64: 6, 256>}, {transform_indices = @transform_1, window_bounds = array<i64: 6, 2>}, {transform_indices = @transform_2, window_bounds = array<i64: 6, 256>}]} {
    %c0 = arith.constant 0 : index
    %c0_0 = arith.constant 0 : index
    %0 = vector.load %arg3[%c0, %c0_0] : memref<6x2xf32, #tpu.memory_space<vmem>>, vector<6x2xf32>
    %1 = vector.extract_strided_slice %0 {offsets = [0, 0], sizes = [6, 1], strides = [1, 1]} : vector<6x2xf32> to vector<6x1xf32>
    %2 = vector.extract_strided_slice %0 {offsets = [0, 1], sizes = [6, 1], strides = [1, 1]} : vector<6x2xf32> to vector<6x1xf32>
    %c0_1 = arith.constant 0 : index
    %c0_2 = arith.constant 0 : index
    %3 = vector.load %arg2[%c0_1, %c0_2] : memref<6x256xf32, #tpu.memory_space<vmem>>, vector<6x256xf32>
    %4 = vector.broadcast %1 : vector<6x1xf32> to vector<6x256xf32>
    %5 = arith.mulf %3, %4 : vector<6x256xf32>
    %6 = vector.broadcast %2 : vector<6x1xf32> to vector<6x256xf32>
    %7 = arith.addf %5, %6 : vector<6x256xf32>
    %c0_3 = arith.constant 0 : index
    %c0_4 = arith.constant 0 : index
    %8 = vector.load %arg4[%c0_3, %c0_4] : memref<6x256xf32, #tpu.memory_space<vmem>>, vector<6x256xf32>
    tpu.vector_store %arg4[%c0_3, %c0_4], %7 {strides = array<i32>} : memref<6x256xf32, #tpu.memory_space<vmem>>, vector<6x256xf32>,
    return
  }
  func.func @transform_0(%arg0: i32, %arg1: i32) -> (i32, i32) {
    %c0_i32 = arith.constant 0 : i32
    return %arg0, %arg1 : i32, i32
  }
  func.func @transform_1(%arg0: i32, %arg1: i32) -> (i32, i32) {
    %c0_i32 = arith.constant 0 : i32
    %c0_i32_0 = arith.constant 0 : i32
    return %arg0, %c0_i32 : i32, i32
  }
  func.func @transform_2(%arg0: i32, %arg1: i32) -> (i32, i32) {
    %c0_i32 = arith.constant 0 : i32
    return %arg0, %arg1 : i32, i32
  }
}

</mosaic_0001>

<bundles_post_ra>
// kernel: tpu_custom_call.1
= control target key start
LH: loop header
LB: loop body
LE: loop exit
PB: predicated region body
PF: predicated region fallthrough
CT: control target
= control target key end

     0   :  { %7 = vsyncpa [#allocation3], 0  ;;  %s135_s0 = inlined_call_operand.hbm [shape: f32[6,256], index: 0, kind: input, shape index: {}]   ;;  %s136_s1 = inlined_call_operand.vmem [shape: f32[6,2], index: 1, kind: input, shape index: {}]   ;;  %s137_s2 = inlined_call_operand.hbm [shape: f32[6,256], index: 2, kind: output, shape index: {}]  }
   0x1   :  { %8 = vsyncpa [#allocation4], 0  ;;  %s107_s9 = smov [#allocation2]  }
   0x2   :  { %s15_s10 = sshll.u32 %s107_s9, 4  ;;  %s16_s10 = int_to_ptr.vmem [resolvable:$true] %s15_s10 }
   0x3   :  { %s71_s11 = scalar_lea.vmem %s16_s10, 256  ;;  %p76_p1 = scmp.lt.s32.totalorder %s16_s10, %s16_s10 }
   0x4   :  { %p72_p0 = scmp.ne.s32.totalorder %s16_s10, %s71_s11  ;;  %p77_p2 = scmp.lt.s32.totalorder %s71_s11, %s71_s11 }
   0x6   :  { %p78_p3 = por %p77_p2, %p76_p1 }
   0x8   :  { %p79_p4 = pnand %p78_p3, %p72_p0 }
   0xa   :  { %82 = shalt.err (!%p79_p4)
}
   0xb   :  { %18 = dma.hbm_to_vmem [thread:$0]  %s135_s0, 256, %s16_s10, [#allocation3]  }
   0xc   :  { %103 = dma.done.wait [#allocation3], 256  }
   0xd   :  { %104 = vsyncadd [#allocation3], 4294967040  ;;  %v108_v0 = vmov 0   ;;  %v24_v1 = vld [vmem:[%s136_s1] sm:$0x3f]  ;;  %v109_v2 = vmov 1  }
   0xe   :  { %61 = vset.pattern.permute.xlu0 %v108_v0  ;;  %v25_v4 = vld [vmem:[#allocation2] sm:$0x3f]  ;;  %v26_v5 = vld [vmem:[#allocation2 + $0x8] sm:$0x3f]  ;;  %s110_s16 = smov [#allocation5]  }
   0xf   :  { %29 = vperm.xlu0 %61, %v24_v1   ;;  %s48_s17 = sshll.u32 %s110_s16, 4  ;;  %s49_s17 = int_to_ptr.vmem [resolvable:$true] %s48_s17 }
  0x10   :  { %s83_s0 = scalar_lea.vmem %s49_s17, 256  ;;  %p88_p6 = scmp.lt.s32.totalorder %s49_s17, %s49_s17 }
  0x11   :  { %p84_p5 = scmp.ne.s32.totalorder %s49_s17, %s83_s0  ;;  %p89_p7 = scmp.lt.s32.totalorder %s83_s0, %s83_s0 }
  0x13   :  { %62 = vset.pattern.permute.xlu0 %v109_v2  ;;  %p90_p8 = por %p89_p7, %p88_p6 }
  0x14   :  { %35 = vperm.xlu0 %62, %v24_v1  }
  0x15   :  { %p91_p9 = pnand %p90_p8, %p84_p5 }
  0x8a   :  { %v30_v3 = vpop.permute.xlu0 %29 }
  0x8b   :  { %v32_v6 = vmul.f32 %v30_v3, %v25_v4  ;;  %v33_v7 = vmul.f32 %v30_v3, %v26_v5 }
  0x8f   :  { %v36_v8 = vpop.permute.xlu0 %35 }
  0x90   :  { %v38_v9 = vadd.f32 %v36_v8, %v32_v6  ;;  %v39_v10 = vadd.f32 %v36_v8, %v33_v7 }
  0x92   :  { %40 = vst [vmem:[#allocation5] sm:$0x3f] %v38_v9  ;;  %41 = vst [vmem:[#allocation5 + $0x8] sm:$0x3f] %v39_v10 }
  0x93   :  { %94 = shalt.err (!%p91_p9)
}
  0x94   :  { %51 = dma.vmem_to_hbm [thread:$0]  %s49_s17, 256, %s137_s2, [#allocation4]  }
  0x95   :  { %105 = dma.done.wait [#allocation4], 256  }
  0x96   :  { %106 = vsyncadd [#allocation4], 4294967040 }
  0x97   :  { %55 = vsyncpa [#allocation3], 1 }
  0x98   :  { %56 = vsyncpa [#allocation4], 1 }

</bundles_post_ra>
